<compile_context>
chip_gen: v5e
topology: v5e:2x2
jax: 0.10.0
libtpu: 0.0.40
codegen_flags: <defaults>
</compile_context>

<pallas_src>
import functools
import math

import jax
import jax.numpy as jnp
from jax.experimental import pallas as pl
from jax.experimental.pallas import tpu as pltpu

LANE = 128
SUBLANE = 8
MAX_TILE_ROWS = 2048  # 2048x128 f32 tile: ~6 MiB total with double buffering.


def _round_up(x: int, k: int) -> int:
    return ((x + k - 1) // k) * k


def _plan_rows(n: int) -> tuple[int, int]:
    """Number of 128-point rows (m) and the row-tile size, sublane aligned."""
    m = max(SUBLANE, pl.cdiv(n, LANE))
    m = _round_up(m, SUBLANE)
    tile_m = min(MAX_TILE_ROWS, m)
    # Guarantee >=2 row tiles when there is enough work so the "parallel"
    # grid axis can be sharded across v7x's two TensorCores.
    if m >= 2 * SUBLANE:
        tile_m = min(tile_m, _round_up(pl.cdiv(m, 2), SUBLANE))
    m = _round_up(m, tile_m)
    return m, tile_m


def _center_cost_kernel(bboxes_ref, xy_ref, out_ref, *, log_alpha, beta_log_alpha):
    # bboxes_ref: SMEM (G, 4) f32      (x_min, y_min, x_max, y_max) per gt
    # xy_ref:     VMEM (2, TILE_M, 128) f32  packed x / y slabs (resident over g)
    # out_ref:    VMEM (TILE_M, 128)   (leading G block dim squeezed via None)
    g = pl.program_id(1)

    # bbox center on the scalar unit (free; SMEM scalar reads).
    cx = (bboxes_ref[g, 0] + bboxes_ref[g, 2]) * 0.5
    cy = (bboxes_ref[g, 1] + bboxes_ref[g, 3]) * 0.5

    dx = cx - xy_ref[0]
    dy = cy - xy_ref[1]
    dist = jnp.sqrt(dx * dx + dy * dy)

    # alpha ** (dist - beta) == exp(dist * ln(alpha) - beta * ln(alpha))
    out_ref[...] = jnp.exp(
        dist * jnp.float32(log_alpha) - jnp.float32(beta_log_alpha)
    ).astype(out_ref.dtype)


def center_cost_matrix(gt_bboxes, grid_points, alpha: float = 10.0,
                       beta: float = 3.0, out_dtype=jnp.float32):
    """
    Batched RTMDet center cost.

    gt_bboxes:   (G, 4) float, (x_min, y_min, x_max, y_max)
    grid_points: (n, 2) float, (x, y)
    returns:     (G, n) cost matrix
    """
    assert float(alpha) > 0.0, "alpha must be > 0 for the log-space formulation"
    gt_bboxes = gt_bboxes.astype(jnp.float32)
    grid_points = grid_points.astype(jnp.float32)
    num_gt = gt_bboxes.shape[0]
    n = grid_points.shape[0]

    # ---- static tiling arithmetic (Python ints) ------------------------------
    m, tile_m = _plan_rows(n)
    n_pad = m * LANE
    grid = (m // tile_m, num_gt)

    # ---- one-time wrapper-side packing (amortized across all G gt boxes) -----
    if n_pad != n:
        gp = jnp.pad(grid_points, ((0, n_pad - n), (0, 0)), mode="edge")
    else:
        gp = grid_points
    xy = gp.T.reshape(2, m, LANE)  # (2, M, 128) packed x / y slabs

    log_alpha = math.log(float(alpha))
    beta_log_alpha = float(beta) * log_alpha

    cost_est = pl.CostEstimate(
        flops=7 * num_gt * n_pad,
        transcendentals=2 * num_gt * n_pad,          # sqrt + exp per (g, point)
        bytes_accessed=4 * (2 * n_pad + num_gt * n_pad + 4 * num_gt),
    )

    out = pl.pallas_call(
        functools.partial(
            _center_cost_kernel,
            log_alpha=log_alpha,
            beta_log_alpha=beta_log_alpha,
        ),
        out_shape=jax.ShapeDtypeStruct((num_gt, m, LANE), out_dtype),
        grid=grid,
        in_specs=[
            # gt bbox table: whole array in SMEM every step (tiny).
            pl.BlockSpec(memory_space=pltpu.MemorySpace.SMEM),
            # packed x/y slab: tiled along rows only, independent of g ->
            # DMA'd once per row tile, reused for all G centers.
            pl.BlockSpec((2, tile_m, LANE), lambda i, g: (0, i, 0)),
        ],
        out_specs=pl.BlockSpec((None, tile_m, LANE), lambda i, g: (g, i, 0)),
        compiler_params=pltpu.CompilerParams(
            dimension_semantics=("parallel", "arbitrary"),
        ),
        cost_estimate=cost_est,
    )(gt_bboxes, xy)

    out = out.reshape(num_gt, n_pad)   # free (contiguous) reshape
    if n_pad != n:
        out = out[:, :n]               # only slice when padding was needed
    return out


def center_cost(gt_bbox, grid_points, alpha: float = 10.0, beta: float = 3.0):
    """Module-equivalent forward: gt_bbox (4,), grid_points (n, 2) -> (n,)."""
    return center_cost_matrix(gt_bbox.reshape(1, 4), grid_points,
                              alpha=alpha, beta=beta)[0]


def center_cost_ref(gt_bbox, grid_points, alpha=10.0, beta=3.0):
    center = (gt_bbox[:2] + gt_bbox[2:]) / 2.0
    dist = jnp.sqrt(jnp.sum((center - grid_points) ** 2, axis=-1))
    return jnp.power(alpha, dist - beta)


if __name__ == "__main__":
    key = jax.random.PRNGKey(0)
    k1, k2, k3, k4, k5 = jax.random.split(key, 5)

    # gt_bbox: (x_min, y_min, x_max, y_max), well-formed
    xy_min = jax.random.uniform(k1, (2,), jnp.float32, 0.0, 4.0)
    wh = jax.random.uniform(k2, (2,), jnp.float32, 1.0, 4.0)
    gt_bbox = jnp.concatenate([xy_min, xy_min + wh])

    # Case 1: tiny grid (n = 8), module-equivalent single gt call.
    n1 = 8
    gp1 = jax.random.uniform(k3, (n1, 2), jnp.float32, 0.0, 8.0)
    out1 = jax.block_until_ready(center_cost(gt_bbox, gp1, alpha=10.0, beta=3.0))
    ref1 = center_cost_ref(gt_bbox, gp1)
    assert out1.shape == (n1,)
    assert jnp.allclose(out1, ref1, rtol=1e-4, atol=1e-4), (out1, ref1)

    # Case 2: non-multiple-of-128 grid (n = 1000) — exercises the padding path.
    n2 = 1000
    gp2 = jax.random.uniform(k4, (n2, 2), jnp.float32, 0.0, 8.0)
    out2 = jax.block_until_ready(center_cost(gt_bbox, gp2, alpha=10.0, beta=3.0))
    ref2 = center_cost_ref(gt_bbox, gp2)
    assert out2.shape == (n2,)
    assert jnp.allclose(out2, ref2, rtol=1e-4, atol=1e-4)

    # Case 3: batched gt boxes (G = 4) on the same points — slab reused per g.
    G = 4
    xy_min_g = jax.random.uniform(k5, (G, 2), jnp.float32, 0.0, 4.0)
    wh_g = jax.random.uniform(k2, (G, 2), jnp.float32, 1.0, 4.0)
    gt_bboxes = jnp.concatenate([xy_min_g, xy_min_g + wh_g], axis=1)
    out3 = jax.block_until_ready(center_cost_matrix(gt_bboxes, gp2))
    ref3 = jnp.stack([center_cost_ref(gt_bboxes[g], gp2) for g in range(G)])
    assert out3.shape == (G, n2)
    assert jnp.allclose(out3, ref3, rtol=1e-4, atol=1e-4)

    # Case 4: RTMDet-sized point count (n = 8400) + G = 3 — exercises 2 row
    # tiles on the "parallel" axis (megacore) and multi-g slab reuse.
    n4 = 8400
    gp4 = jax.random.uniform(k3, (n4, 2), jnp.float32, 0.0, 64.0)
    out4 = jax.block_until_ready(center_cost_matrix(gt_bboxes[:3], gp4))
    ref4 = jnp.stack([center_cost_ref(gt_bboxes[g], gp4) for g in range(3)])
    assert out4.shape == (3, n4)
    assert jnp.allclose(out4, ref4, rtol=1e-4, atol=1e-4)

    print("KERNEL_OK")
</pallas_src>

<mosaic_0001>
module attributes {stable_mosaic.version = 11 : i64} {
  func.func @_center_cost_kernel(%arg0: i32, %arg1: i32, %arg2: memref<1x4xf32, #tpu.memory_space<smem>>, %arg3: memref<2x8x128xf32, #tpu.memory_space<vmem>>, %arg4: memref<1x8x128xf32, #tpu.memory_space<vmem>>) attributes {dimension_semantics = [#tpu.dimension_semantics<parallel>, #tpu.dimension_semantics<arbitrary>], iteration_bounds = array<i64: 1, 1>, scalar_prefetch = 0 : i64, scratch_operands = 0 : i64, tpu.core_type = #tpu.core_type<tc>, window_params = [{transform_indices = @transform_0, window_bounds = array<i64: 1, 4>}, {transform_indices = @transform_1, window_bounds = array<i64: 2, 8, 128>}, {transform_indices = @transform_2, window_bounds = array<i64: 1, 8, 128>}]} {
    %0 = arith.index_cast %arg1 : i32 to index
    %c0 = arith.constant 0 : index
    %1 = memref.load %arg2[%0, %c0] : memref<1x4xf32, #tpu.memory_space<smem>>
    %2 = arith.index_cast %arg1 : i32 to index
    %c2 = arith.constant 2 : index
    %3 = memref.load %arg2[%2, %c2] : memref<1x4xf32, #tpu.memory_space<smem>>
    %4 = arith.addf %1, %3 : f32
    %cst = arith.constant 5.000000e-01 : f32
    %5 = arith.mulf %4, %cst : f32
    %6 = arith.index_cast %arg1 : i32 to index
    %c1 = arith.constant 1 : index
    %7 = memref.load %arg2[%6, %c1] : memref<1x4xf32, #tpu.memory_space<smem>>
    %8 = arith.index_cast %arg1 : i32 to index
    %c3 = arith.constant 3 : index
    %9 = memref.load %arg2[%8, %c3] : memref<1x4xf32, #tpu.memory_space<smem>>
    %10 = arith.addf %7, %9 : f32
    %cst_0 = arith.constant 5.000000e-01 : f32
    %11 = arith.mulf %10, %cst_0 : f32
    %c0_1 = arith.constant 0 : index
    %c0_2 = arith.constant 0 : index
    %c0_3 = arith.constant 0 : index
    %12 = vector.load %arg3[%c0_1, %c0_2, %c0_3] : memref<2x8x128xf32, #tpu.memory_space<vmem>>, vector<1x8x128xf32>
    %13 = vector.shape_cast %12 : vector<1x8x128xf32> to vector<8x128xf32>
    %14 = vector.broadcast %5 : f32 to vector<8x128xf32>
    %15 = arith.subf %14, %13 : vector<8x128xf32>
    %c1_4 = arith.constant 1 : index
    %c0_5 = arith.constant 0 : index
    %c0_6 = arith.constant 0 : index
    %16 = vector.load %arg3[%c1_4, %c0_5, %c0_6] : memref<2x8x128xf32, #tpu.memory_space<vmem>>, vector<1x8x128xf32>
    %17 = vector.shape_cast %16 : vector<1x8x128xf32> to vector<8x128xf32>
    %18 = vector.broadcast %11 : f32 to vector<8x128xf32>
    %19 = arith.subf %18, %17 : vector<8x128xf32>
    %20 = arith.mulf %15, %15 : vector<8x128xf32>
    %21 = arith.mulf %19, %19 : vector<8x128xf32>
    %22 = arith.addf %20, %21 : vector<8x128xf32>
    %23 = math.sqrt %22 : vector<8x128xf32>
    %cst_7 = arith.constant 2.30258512 : f32
    %24 = vector.broadcast %cst_7 : f32 to vector<8x128xf32>
    %25 = arith.mulf %23, %24 : vector<8x128xf32>
    %cst_8 = arith.constant 6.90775537 : f32
    %26 = vector.broadcast %cst_8 : f32 to vector<8x128xf32>
    %27 = arith.subf %25, %26 : vector<8x128xf32>
    %28 = math.exp %27 : vector<8x128xf32>
    %c0_9 = arith.constant 0 : index
    %c0_10 = arith.constant 0 : index
    %c0_11 = arith.constant 0 : index
    %29 = vector.load %arg4[%c0_9, %c0_10, %c0_11] : memref<1x8x128xf32, #tpu.memory_space<vmem>>, vector<1x8x128xf32>
    %30 = vector.shape_cast %29 : vector<1x8x128xf32> to vector<8x128xf32>
    %31 = vector.shape_cast %28 : vector<8x128xf32> to vector<1x8x128xf32>
    tpu.vector_store %arg4[%c0_9, %c0_10, %c0_11], %31 {strides = array<i32>} : memref<1x8x128xf32, #tpu.memory_space<vmem>>, vector<1x8x128xf32>,
    return
  }
  func.func @transform_0(%arg0: i32, %arg1: i32) -> (i32, i32) {
    %c0_i32 = arith.constant 0 : i32
    %c0_i32_0 = arith.constant 0 : i32
    %c0_i32_1 = arith.constant 0 : i32
    return %c0_i32, %c0_i32_0 : i32, i32
  }
  func.func @transform_1(%arg0: i32, %arg1: i32) -> (i32, i32, i32) {
    %c0_i32 = arith.constant 0 : i32
    %c0_i32_0 = arith.constant 0 : i32
    %c0_i32_1 = arith.constant 0 : i32
    return %c0_i32, %arg0, %c0_i32_0 : i32, i32, i32
  }
  func.func @transform_2(%arg0: i32, %arg1: i32) -> (i32, i32, i32) {
    %c0_i32 = arith.constant 0 : i32
    %c0_i32_0 = arith.constant 0 : i32
    return %arg1, %arg0, %c0_i32 : i32, i32, i32
  }
}

</mosaic_0001>

<bundles_post_ra>
// kernel: tpu_custom_call.1
= control target key start
LH: loop header
LB: loop body
LE: loop exit
PB: predicated region body
PF: predicated region fallthrough
CT: control target
= control target key end

     0   :  { %7 = vsyncpa [#allocation5], 0  ;;  %s206_s0 = inlined_call_operand.hbm [shape: f32[1,4], index: 0, kind: input, shape index: {}]   ;;  %s207_s1 = inlined_call_operand.hbm [shape: f32[2,8,128], index: 1, kind: input, shape index: {}]   ;;  %s208_s2 = inlined_call_operand.hbm [shape: f32[1,8,128], index: 2, kind: output, shape index: {}]  }
   0x1   :  { %8 = vsyncpa [#allocation3], 0 }
   0x2   :  { %9 = vsyncpa [#allocation4], 0  ;;  %s15_s11 = sshll.u32 %s206_s0, 4  ;;  %s23_s14 = sshll.u32 %s207_s1, 4  ;;  %s16_s11 = int_to_ptr.hbm [resolvable:$true] %s15_s11  ;;  %s24_s14 = int_to_ptr.hbm [resolvable:$true] %s23_s14 }
   0x3   :  { %s177_s15 = smov [#allocation2]   ;;  %s178_s16 = smov [#allocation6]  }
   0x4   :  { %18 = dma.hbm_to_smem %s16_s11, 16, %s177_s15, [#allocation5]  }
   0x5   :  { %s25_s17 = sshll.u32 %s178_s16, 4  ;;  %s179_s18 = smov 128   ;;  %s26_s17 = int_to_ptr.vmem [resolvable:$true] %s25_s17 }
   0x6   :  { %s180_s19 = smov 8  }
   0x7   :  { %31 = dma.hbm_to_vmem [thread:$0]  %s24_s14, 256, %s26_s17, [#allocation3], %s179_s18, %s179_s18, %s180_s19  }
   0x8   :  { %171 = dma.done.wait [#allocation5], 16  }
   0x9   :  { %172 = vsyncadd [#allocation5], 4294967280 }
   0xa   :  { %173 = dma.done.wait [#allocation3], 256  }
   0xb   :  { %174 = vsyncadd [#allocation3], 4294967040 }
   0xc   :  { %40 = sfence }
   0xd   :  { %s42_s0 = sld [smem:[#allocation2]]  ;;  %v53_v0 = vld [vmem:[#allocation6] sm:$0xff]  ;;  %v57_v2 = vld [vmem:[#allocation6 + $0x8] sm:$0xff]  ;;  %s181_s26 = smov [#allocation7]  }
   0xe   :  { %s98_s20 = sld [smem:[#allocation2 + $0x2]]  ;;  %s85_s27 = sshll.u32 %s181_s26, 4  ;;  %s86_s27 = int_to_ptr.vmem [resolvable:$true] %s85_s27 }
   0xf   :  { %s99_s21 = sld [smem:[#allocation2 + $0x1]]  ;;  %s87_s30 = sshll.u32 %s208_s2, 4  ;;  %s88_s30 = int_to_ptr.hbm [resolvable:$true] %s87_s30 }
  0x10   :  { %s100_s22 = sld [smem:[#allocation2 + $0x3]] }
  0x14   :  { %s45_s23 = sadd.f32 %s98_s20, %s42_s0 }
  0x16   :  { %s46_s1 = smul.f32 0.5, %s45_s23  ;;  %s51_s24 = sadd.f32 %s100_s22, %s99_s21 }
  0x18   :  { %s52_s25 = smul.f32 0.5, %s51_s24  ;;  %v54_v1 = vstv %s46_s1 }
  0x19   :  { %v55_v3 = vsub.f32 %v54_v1, %v53_v0 }
  0x1a   :  { %v58_v4 = vstv %s52_s25 }
  0x1b   :  { %v59_v5 = vsub.f32 %v58_v4, %v57_v2  ;;  %v60_v6 = vmul.f32 %v55_v3, %v55_v3 }
  0x1d   :  { %v61_v7 = vmul.f32 %v59_v5, %v59_v5 }
  0x1f   :  { %v62_v8 = vadd.f32 %v61_v7, %v60_v6 }
  0x21   :  { %107 = vrsqrt.f32 %v62_v8  ;;  %vm70_vm0 = vcmp.eq.f32.partialorder %v62_v8, inf  ;;  %v73_v15 = vand.u32 2147483648, %v62_v8  ;;  %vm72_vm1 = vcmp.eq.f32.partialorder %v62_v8, 0.0 }
  0x27   :  { %v108_v9 = vpop.eup %107 }
  0x28   :  { %v64_v10 = vmul.f32 %v108_v9, %v62_v8 }
  0x2a   :  { %v65_v11 = vmul.f32 %v108_v9, %v64_v10 }
  0x2c   :  { %v66_v12 = vmul.f32 0.5, %v65_v11 }
  0x2e   :  { %v67_v13 = vsub.f32 1.5, %v66_v12 }
  0x30   :  { %v68_v14 = vmul.f32 %v108_v9, %v67_v13 }
  0x32   :  { %v69_v16 = vmul.f32 %v68_v14, %v62_v8 }
  0x34   :  { %v71_v17 = vsel %vm70_vm0, %v62_v8, %v69_v16 }
  0x35   :  { %v74_v18 = vsel %vm72_vm1, %v73_v15, %v71_v17 }
  0x36   :  { %v75_v19 = vmul.f32 2.3025851, %v74_v18 }
  0x38   :  { %v101_v20 = vadd.f32 -6.9077554, %v75_v19 }
  0x3a   :  { %v77_v21 = vmul.f32 1.442695, %v101_v20 }
  0x3c   :  { %109 = vpow2.f32 %v77_v21 }
  0x42   :  { %v110_v22 = vpop.eup %109 }
  0x43   :  { %79 = vst [vmem:[#allocation7] sm:$0xff] %v110_v22 }
  0x44   :  { %90 = dma.vmem_to_hbm [thread:$0]  %s86_s27, 128, %s88_s30, [#allocation4]  }
  0x45   :  { %175 = dma.done.wait [#allocation4], 128  }
  0x46   :  { %176 = vsyncadd [#allocation4], 4294967168 }
  0x47   :  { %95 = vsyncpa [#allocation3], 1 }
  0x48   :  { %96 = vsyncpa [#allocation4], 1 }
  0x49   :  { %97 = vsyncpa [#allocation5], 1 }

</bundles_post_ra>
